<compile_context>
chip_gen: v6e
topology: v6e:2x2x1
jax: 0.10.0
libtpu: 0.0.40
codegen_flags: <defaults>
</compile_context>

<pallas_src>
import functools

import jax
import jax.numpy as jnp
from jax.experimental import pallas as pl
from jax.experimental.pallas import tpu as pltpu


def rnn_kernel(x_ref, w_ih_ref, w_hh_ref, b_ref, w_fc_ref, b_fc_ref,
               out_ref, xw_ref):
    """Single-invocation kernel.

    x_ref   : (T*Bp, Dip)  time-major input, flattened over (time, batch), zero-padded
    w_ih_ref: (Dip, Hp)    W_ih^T (padded)
    w_hh_ref: (Hp, Hp)     W_hh^T (padded)
    b_ref   : (1, Hp)      b_ih + b_hh (fused, padded)
    w_fc_ref: (Hp, Dop)    W_fc^T (padded)
    b_fc_ref: (1, Dop)     b_fc (padded)
    out_ref : (Bp, Dop)    lane-dense output
    xw_ref  : (T, Bp, Hp)  VMEM scratch: hoisted input projection for every timestep
    """
    T, Bp, Hp = xw_ref.shape

    # Phase 1 (parallel, MXU-friendly): input projection for ALL timesteps in one matmul,
    # with the fused bias folded in. Reshape (T*Bp, Hp) -> (T, Bp, Hp) is tile-aligned
    # (Bp multiple of 8, Hp multiple of 128) so it's layout-preserving.
    proj = (
        jnp.dot(x_ref[...], w_ih_ref[...], preferred_element_type=jnp.float32)
        + b_ref[...]
    )
    xw_ref[...] = proj.reshape(T, Bp, Hp)

    # Phase 2 (serial recurrence): h_t = relu(xw_t + h_{t-1} @ W_hh^T).
    # Hidden state lives in vregs as the loop carry -> no per-step VMEM round-trip.
    w_hh = w_hh_ref[...]

    def step(t, h):
        return jnp.maximum(
            xw_ref[t] + jnp.dot(h, w_hh, preferred_element_type=jnp.float32),
            0.0,
        )

    h_T = jax.lax.fori_loop(
        0, T, step, jnp.zeros((Bp, Hp), jnp.float32), unroll=min(T, 8)
    )

    # Phase 3: final Linear on the last hidden state.
    out_ref[...] = (
        jnp.dot(h_T, w_fc_ref[...], preferred_element_type=jnp.float32)
        + b_fc_ref[...]
    ).astype(out_ref.dtype)


def _round_up(x, m):
    return ((x + m - 1) // m) * m


def preprocess_params(params):
    """One-time parameter packing: transpose, fuse biases, zero-pad to (8,128)-dense tiles.

    Hoisted out of the per-call path so steady-state latency only pays for the input
    transform + kernel.
    """
    w_ih, w_hh, b_ih, b_hh, w_fc, b_fc = params
    H, D_in = w_ih.shape
    D_out = w_fc.shape[0]
    f32 = jnp.float32

    Hp = _round_up(H, 128)
    Dip = _round_up(D_in, 128)
    Dop = _round_up(D_out, 128)

    w_ih_p = jnp.pad(w_ih.T.astype(f32), ((0, Dip - D_in), (0, Hp - H)))    # (Dip, Hp)
    w_hh_p = jnp.pad(w_hh.T.astype(f32), ((0, Hp - H), (0, Hp - H)))        # (Hp, Hp)
    w_fc_p = jnp.pad(w_fc.T.astype(f32), ((0, Hp - H), (0, Dop - D_out)))   # (Hp, Dop)
    b_p = jnp.pad((b_ih + b_hh).astype(f32).reshape(1, H),
                  ((0, 0), (0, Hp - H)))                                    # (1, Hp)
    b_fc_p = jnp.pad(b_fc.astype(f32).reshape(1, D_out),
                     ((0, 0), (0, Dop - D_out)))                            # (1, Dop)
    return (w_ih_p, w_hh_p, b_p, w_fc_p, b_fc_p), D_out


@functools.partial(jax.jit, static_argnames=("d_out",))
def rnn_forward_packed(x, w_ih_p, w_hh_p, b_p, w_fc_p, b_fc_p, *, d_out):
    """x: (batch, seq, n_input) float32, batch_first=True (PyTorch convention)."""
    B, T, D_in = x.shape
    Dip, Hp = w_ih_p.shape
    Dop = w_fc_p.shape[1]
    Bp = _round_up(B, 8)
    f32 = jnp.float32

    # Per-call input glue (fused under jit): time-major flattening + zero padding.
    x_tm = jnp.transpose(x, (1, 0, 2)).astype(f32)                        # (T, B, D_in)
    x_tm = jnp.pad(x_tm, ((0, 0), (0, Bp - B), (0, Dip - D_in)))
    x2d = x_tm.reshape(T * Bp, Dip)                                       # (T*Bp, Dip)

    vmem_spec = pl.BlockSpec(memory_space=pltpu.MemorySpace.VMEM)

    out_p = pl.pallas_call(
        rnn_kernel,
        out_shape=jax.ShapeDtypeStruct((Bp, Dop), f32),
        in_specs=[vmem_spec] * 6,
        out_specs=vmem_spec,
        scratch_shapes=[
            pltpu.VMEM((T, Bp, Hp), f32),   # hoisted x@W_ih^T (+bias) for all timesteps
        ],
    )(x2d, w_ih_p, w_hh_p, b_p, w_fc_p, b_fc_p)

    # Padded-batch rows carry relu(bias) garbage; padded hidden/output columns stay zero.
    # Slice both off here.
    return out_p[:B, :d_out]


def rnn_forward(x, params):
    """Convenience wrapper: packs params (ideally done once) and runs the jitted forward."""
    packed, d_out = preprocess_params(params)
    return rnn_forward_packed(x, *packed, d_out=d_out)


def reference_forward(x, params):
    """Pure-JAX reference matching nn.RNN(relu) + nn.Linear semantics."""
    w_ih, w_hh, b_ih, b_hh, w_fc, b_fc = params
    B = x.shape[0]
    H = w_ih.shape[0]
    h = jnp.zeros((B, H), jnp.float32)

    def step(h, x_t):
        h = jnp.maximum(x_t @ w_ih.T + b_ih + h @ w_hh.T + b_hh, 0.0)
        return h, None

    h_T, _ = jax.lax.scan(step, h, jnp.transpose(x, (1, 0, 2)))
    return h_T @ w_fc.T + b_fc


def init_params(key, n_input, n_hidden, n_output):
    # Deterministic init mimicking PyTorch's U(-1/sqrt(H), 1/sqrt(H)).
    k = jax.random.split(key, 6)
    s = 1.0 / jnp.sqrt(jnp.float32(n_hidden))
    w_ih = jax.random.uniform(k[0], (n_hidden, n_input), jnp.float32, -s, s)
    w_hh = jax.random.uniform(k[1], (n_hidden, n_hidden), jnp.float32, -s, s)
    b_ih = jax.random.uniform(k[2], (n_hidden,), jnp.float32, -s, s)
    b_hh = jax.random.uniform(k[3], (n_hidden,), jnp.float32, -s, s)
    w_fc = jax.random.uniform(k[4], (n_output, n_hidden), jnp.float32, -s, s)
    b_fc = jax.random.uniform(k[5], (n_output,), jnp.float32, -s, s)
    return (w_ih, w_hh, b_ih, b_hh, w_fc, b_fc)


if __name__ == "__main__":
    # Small shapes consistent with the module: batch_first x of (batch, seq, n_input).
    batch, seq_len, n_input, n_hidden = 4, 8, 16, 32
    n_output = n_input  # module sets n_output = n_input

    key = jax.random.PRNGKey(0)
    kx, kp = jax.random.split(key)
    x = jax.random.normal(kx, (batch, seq_len, n_input), jnp.float32)
    params = init_params(kp, n_input, n_hidden, n_output)

    # One-time parameter packing (hoisted out of the per-call path), then jitted forward.
    packed, d_out = preprocess_params(params)
    out = rnn_forward_packed(x, *packed, d_out=d_out)
    out = jax.block_until_ready(out)

    ref = reference_forward(x, params)
    assert out.shape == (batch, n_output)
    assert jnp.allclose(out, ref, atol=1e-4, rtol=1e-4), "mismatch vs JAX reference"

    print("KERNEL_OK")
</pallas_src>

<mosaic_0001>
module attributes {stable_mosaic.version = 11 : i64} {
  func.func @rnn_kernel(%arg0: memref<64x128xf32, #tpu.memory_space<vmem>>, %arg1: memref<128x128xf32, #tpu.memory_space<vmem>>, %arg2: memref<128x128xf32, #tpu.memory_space<vmem>>, %arg3: memref<1x128xf32, #tpu.memory_space<vmem>>, %arg4: memref<128x128xf32, #tpu.memory_space<vmem>>, %arg5: memref<1x128xf32, #tpu.memory_space<vmem>>, %arg6: memref<8x128xf32, #tpu.memory_space<vmem>>, %arg7: memref<8x8x128xf32, #tpu.memory_space<vmem>>) attributes {dimension_semantics = [], scalar_prefetch = 0 : i64, scratch_operands = 1 : i64, tpu.core_type = #tpu.core_type<tc>} {
    %c0 = arith.constant 0 : index
    %c0_0 = arith.constant 0 : index
    %0 = vector.load %arg0[%c0, %c0_0] : memref<64x128xf32, #tpu.memory_space<vmem>>, vector<64x128xf32>
    %c0_1 = arith.constant 0 : index
    %c0_2 = arith.constant 0 : index
    %1 = vector.load %arg1[%c0_1, %c0_2] : memref<128x128xf32, #tpu.memory_space<vmem>>, vector<128x128xf32>
    %cst = arith.constant dense<0.000000e+00> : vector<64x128xf32>
    %2 = tpu.matmul %0, %1, %cst {dimension_numbers = #tpu.dot_dimension_numbers<[1], [0], [0], [1], [0, 0, 1, 1], [], []>} : vector<64x128xf32>, vector<128x128xf32>, vector<64x128xf32> -> vector<64x128xf32>
    %c0_3 = arith.constant 0 : index
    %c0_4 = arith.constant 0 : index
    %3 = vector.load %arg3[%c0_3, %c0_4] : memref<1x128xf32, #tpu.memory_space<vmem>>, vector<1x128xf32>
    %4 = vector.broadcast %3 : vector<1x128xf32> to vector<64x128xf32>
    %5 = arith.addf %2, %4 : vector<64x128xf32>
    %6 = vector.shape_cast %5 : vector<64x128xf32> to vector<8x8x128xf32>
    %c0_5 = arith.constant 0 : index
    %c0_6 = arith.constant 0 : index
    %c0_7 = arith.constant 0 : index
    %7 = vector.load %arg7[%c0_5, %c0_6, %c0_7] : memref<8x8x128xf32, #tpu.memory_space<vmem>>, vector<8x8x128xf32>
    tpu.vector_store %arg7[%c0_5, %c0_6, %c0_7], %6 {strides = array<i32>} : memref<8x8x128xf32, #tpu.memory_space<vmem>>, vector<8x8x128xf32>,
    %c0_8 = arith.constant 0 : index
    %c0_9 = arith.constant 0 : index
    %8 = vector.load %arg2[%c0_8, %c0_9] : memref<128x128xf32, #tpu.memory_space<vmem>>, vector<128x128xf32>
    %cst_10 = arith.constant 0.000000e+00 : f32
    %9 = vector.broadcast %cst_10 : f32 to vector<8x128xf32>
    %c0_i32 = arith.constant 0 : i32
    %10 = arith.index_cast %c0_i32 : i32 to index
    %c0_11 = arith.constant 0 : index
    %c0_12 = arith.constant 0 : index
    %11 = vector.load %arg7[%10, %c0_11, %c0_12] : memref<8x8x128xf32, #tpu.memory_space<vmem>>, vector<1x8x128xf32>
    %12 = vector.shape_cast %11 : vector<1x8x128xf32> to vector<8x128xf32>
    %cst_13 = arith.constant dense<0.000000e+00> : vector<8x128xf32>
    %13 = tpu.matmul %9, %8, %cst_13 {dimension_numbers = #tpu.dot_dimension_numbers<[1], [0], [0], [1], [0, 0, 1, 1], [], []>} : vector<8x128xf32>, vector<128x128xf32>, vector<8x128xf32> -> vector<8x128xf32>
    %14 = arith.addf %12, %13 : vector<8x128xf32>
    %cst_14 = arith.constant 0.000000e+00 : f32
    %15 = vector.broadcast %cst_14 : f32 to vector<8x128xf32>
    %16 = arith.maximumf %14, %15 : vector<8x128xf32>
    %c1_i32 = arith.constant 1 : i32
    %17 = arith.index_cast %c1_i32 : i32 to index
    %c0_15 = arith.constant 0 : index
    %c0_16 = arith.constant 0 : index
    %18 = vector.load %arg7[%17, %c0_15, %c0_16] : memref<8x8x128xf32, #tpu.memory_space<vmem>>, vector<1x8x128xf32>
    %19 = vector.shape_cast %18 : vector<1x8x128xf32> to vector<8x128xf32>
    %cst_17 = arith.constant dense<0.000000e+00> : vector<8x128xf32>
    %20 = tpu.matmul %16, %8, %cst_17 {dimension_numbers = #tpu.dot_dimension_numbers<[1], [0], [0], [1], [0, 0, 1, 1], [], []>} : vector<8x128xf32>, vector<128x128xf32>, vector<8x128xf32> -> vector<8x128xf32>
    %21 = arith.addf %19, %20 : vector<8x128xf32>
    %cst_18 = arith.constant 0.000000e+00 : f32
    %22 = vector.broadcast %cst_18 : f32 to vector<8x128xf32>
    %23 = arith.maximumf %21, %22 : vector<8x128xf32>
    %c2_i32 = arith.constant 2 : i32
    %24 = arith.index_cast %c2_i32 : i32 to index
    %c0_19 = arith.constant 0 : index
    %c0_20 = arith.constant 0 : index
    %25 = vector.load %arg7[%24, %c0_19, %c0_20] : memref<8x8x128xf32, #tpu.memory_space<vmem>>, vector<1x8x128xf32>
    %26 = vector.shape_cast %25 : vector<1x8x128xf32> to vector<8x128xf32>
    %cst_21 = arith.constant dense<0.000000e+00> : vector<8x128xf32>
    %27 = tpu.matmul %23, %8, %cst_21 {dimension_numbers = #tpu.dot_dimension_numbers<[1], [0], [0], [1], [0, 0, 1, 1], [], []>} : vector<8x128xf32>, vector<128x128xf32>, vector<8x128xf32> -> vector<8x128xf32>
    %28 = arith.addf %26, %27 : vector<8x128xf32>
    %cst_22 = arith.constant 0.000000e+00 : f32
    %29 = vector.broadcast %cst_22 : f32 to vector<8x128xf32>
    %30 = arith.maximumf %28, %29 : vector<8x128xf32>
    %c3_i32 = arith.constant 3 : i32
    %31 = arith.index_cast %c3_i32 : i32 to index
    %c0_23 = arith.constant 0 : index
    %c0_24 = arith.constant 0 : index
    %32 = vector.load %arg7[%31, %c0_23, %c0_24] : memref<8x8x128xf32, #tpu.memory_space<vmem>>, vector<1x8x128xf32>
    %33 = vector.shape_cast %32 : vector<1x8x128xf32> to vector<8x128xf32>
    %cst_25 = arith.constant dense<0.000000e+00> : vector<8x128xf32>
    %34 = tpu.matmul %30, %8, %cst_25 {dimension_numbers = #tpu.dot_dimension_numbers<[1], [0], [0], [1], [0, 0, 1, 1], [], []>} : vector<8x128xf32>, vector<128x128xf32>, vector<8x128xf32> -> vector<8x128xf32>
    %35 = arith.addf %33, %34 : vector<8x128xf32>
    %cst_26 = arith.constant 0.000000e+00 : f32
    %36 = vector.broadcast %cst_26 : f32 to vector<8x128xf32>
    %37 = arith.maximumf %35, %36 : vector<8x128xf32>
    %c4_i32 = arith.constant 4 : i32
    %38 = arith.index_cast %c4_i32 : i32 to index
    %c0_27 = arith.constant 0 : index
    %c0_28 = arith.constant 0 : index
    %39 = vector.load %arg7[%38, %c0_27, %c0_28] : memref<8x8x128xf32, #tpu.memory_space<vmem>>, vector<1x8x128xf32>
    %40 = vector.shape_cast %39 : vector<1x8x128xf32> to vector<8x128xf32>
    %cst_29 = arith.constant dense<0.000000e+00> : vector<8x128xf32>
    %41 = tpu.matmul %37, %8, %cst_29 {dimension_numbers = #tpu.dot_dimension_numbers<[1], [0], [0], [1], [0, 0, 1, 1], [], []>} : vector<8x128xf32>, vector<128x128xf32>, vector<8x128xf32> -> vector<8x128xf32>
    %42 = arith.addf %40, %41 : vector<8x128xf32>
    %cst_30 = arith.constant 0.000000e+00 : f32
    %43 = vector.broadcast %cst_30 : f32 to vector<8x128xf32>
    %44 = arith.maximumf %42, %43 : vector<8x128xf32>
    %c5_i32 = arith.constant 5 : i32
    %45 = arith.index_cast %c5_i32 : i32 to index
    %c0_31 = arith.constant 0 : index
    %c0_32 = arith.constant 0 : index
    %46 = vector.load %arg7[%45, %c0_31, %c0_32] : memref<8x8x128xf32, #tpu.memory_space<vmem>>, vector<1x8x128xf32>
    %47 = vector.shape_cast %46 : vector<1x8x128xf32> to vector<8x128xf32>
    %cst_33 = arith.constant dense<0.000000e+00> : vector<8x128xf32>
    %48 = tpu.matmul %44, %8, %cst_33 {dimension_numbers = #tpu.dot_dimension_numbers<[1], [0], [0], [1], [0, 0, 1, 1], [], []>} : vector<8x128xf32>, vector<128x128xf32>, vector<8x128xf32> -> vector<8x128xf32>
    %49 = arith.addf %47, %48 : vector<8x128xf32>
    %cst_34 = arith.constant 0.000000e+00 : f32
    %50 = vector.broadcast %cst_34 : f32 to vector<8x128xf32>
    %51 = arith.maximumf %49, %50 : vector<8x128xf32>
    %c6_i32 = arith.constant 6 : i32
    %52 = arith.index_cast %c6_i32 : i32 to index
    %c0_35 = arith.constant 0 : index
    %c0_36 = arith.constant 0 : index
    %53 = vector.load %arg7[%52, %c0_35, %c0_36] : memref<8x8x128xf32, #tpu.memory_space<vmem>>, vector<1x8x128xf32>
    %54 = vector.shape_cast %53 : vector<1x8x128xf32> to vector<8x128xf32>
    %cst_37 = arith.constant dense<0.000000e+00> : vector<8x128xf32>
    %55 = tpu.matmul %51, %8, %cst_37 {dimension_numbers = #tpu.dot_dimension_numbers<[1], [0], [0], [1], [0, 0, 1, 1], [], []>} : vector<8x128xf32>, vector<128x128xf32>, vector<8x128xf32> -> vector<8x128xf32>
    %56 = arith.addf %54, %55 : vector<8x128xf32>
    %cst_38 = arith.constant 0.000000e+00 : f32
    %57 = vector.broadcast %cst_38 : f32 to vector<8x128xf32>
    %58 = arith.maximumf %56, %57 : vector<8x128xf32>
    %c7_i32 = arith.constant 7 : i32
    %59 = arith.index_cast %c7_i32 : i32 to index
    %c0_39 = arith.constant 0 : index
    %c0_40 = arith.constant 0 : index
    %60 = vector.load %arg7[%59, %c0_39, %c0_40] : memref<8x8x128xf32, #tpu.memory_space<vmem>>, vector<1x8x128xf32>
    %61 = vector.shape_cast %60 : vector<1x8x128xf32> to vector<8x128xf32>
    %cst_41 = arith.constant dense<0.000000e+00> : vector<8x128xf32>
    %62 = tpu.matmul %58, %8, %cst_41 {dimension_numbers = #tpu.dot_dimension_numbers<[1], [0], [0], [1], [0, 0, 1, 1], [], []>} : vector<8x128xf32>, vector<128x128xf32>, vector<8x128xf32> -> vector<8x128xf32>
    %63 = arith.addf %61, %62 : vector<8x128xf32>
    %cst_42 = arith.constant 0.000000e+00 : f32
    %64 = vector.broadcast %cst_42 : f32 to vector<8x128xf32>
    %65 = arith.maximumf %63, %64 : vector<8x128xf32>
    %c8_i32 = arith.constant 8 : i32
    %c0_43 = arith.constant 0 : index
    %c0_44 = arith.constant 0 : index
    %66 = vector.load %arg4[%c0_43, %c0_44] : memref<128x128xf32, #tpu.memory_space<vmem>>, vector<128x128xf32>
    %cst_45 = arith.constant dense<0.000000e+00> : vector<8x128xf32>
    %67 = tpu.matmul %65, %66, %cst_45 {dimension_numbers = #tpu.dot_dimension_numbers<[1], [0], [0], [1], [0, 0, 1, 1], [], []>} : vector<8x128xf32>, vector<128x128xf32>, vector<8x128xf32> -> vector<8x128xf32>
    %c0_46 = arith.constant 0 : index
    %c0_47 = arith.constant 0 : index
    %68 = vector.load %arg5[%c0_46, %c0_47] : memref<1x128xf32, #tpu.memory_space<vmem>>, vector<1x128xf32>
    %69 = vector.broadcast %68 : vector<1x128xf32> to vector<8x128xf32>
    %70 = arith.addf %67, %69 : vector<8x128xf32>
    %c0_48 = arith.constant 0 : index
    %c0_49 = arith.constant 0 : index
    %71 = vector.load %arg6[%c0_48, %c0_49] : memref<8x128xf32, #tpu.memory_space<vmem>>, vector<8x128xf32>
    tpu.vector_store %arg6[%c0_48, %c0_49], %70 {strides = array<i32>} : memref<8x128xf32, #tpu.memory_space<vmem>>, vector<8x128xf32>,
    return
  }
}

</mosaic_0001>

<bundles_post_ra>
// kernel: rnn_forward_packed.1
= control target key start
LH: loop header
LB: loop body
LE: loop exit
PB: predicated region body
PF: predicated region fallthrough
CT: control target
= control target key end

     0   :  { %11 = vsyncpa [#allocation4], 0  ;;  %s1966_s0 = inlined_call_operand.vmem [shape: f32[64,128], index: 0, kind: input, shape index: {}]   ;;  %s1967_s1 = inlined_call_operand.vmem [shape: f32[128,128], index: 1, kind: input, shape index: {}]   ;;  %s1968_s2 = inlined_call_operand.hbm [shape: f32[128,128], index: 2, kind: input, shape index: {}]   ;;  %s1969_s3 = inlined_call_operand.vmem [shape: f32[1,128], index: 3, kind: input, shape index: {}]   ;;  %s1970_s4 = inlined_call_operand.hbm [shape: f32[128,128], index: 4, kind: input, shape index: {}]   ;;  %s1971_s5 = inlined_call_operand.vmem [shape: f32[1,128], index: 5, kind: input, shape index: {}]   ;;  %s1972_s6 = inlined_call_operand.vmem [shape: f32[8,128], index: 6, kind: output, shape index: {}]  }
   0x1   :  { %12 = vsyncpa [#allocation6], 0  ;;  %s1490_s21 = smov [#allocation3]  }
   0x2   :  { %s22_s22 = sshll.u32 %s1490_s21, 4  ;;  %s23_s22 = int_to_ptr.vmem [resolvable:$true] %s22_s22 }
   0x3   :  { %s1454_s23 = scalar_lea.vmem %s23_s22, 2048  ;;  %p1459_p1 = scmp.lt.s32.totalorder %s23_s22, %s23_s22 }
   0x4   :  { %p1455_p0 = scmp.ne.s32.totalorder %s23_s22, %s1454_s23  ;;  %p1460_p2 = scmp.lt.s32.totalorder %s1454_s23, %s1454_s23 }
   0x6   :  { %p1461_p3 = por %p1460_p2, %p1459_p1 }
   0x8   :  { %p1462_p4 = pnand %p1461_p3, %p1455_p0 }
   0xa   :  { %1465 = shalt.err (!%p1462_p4)
}
   0xb   :  { %s1491_s24 = smov 128   ;;  %s1492_s25 = smov 8  }
   0xc   :  { %28 = dma.hbm_to_vmem [thread:$0]  %s1968_s2, 2048, %s23_s22, [#allocation4], %s1491_s24, %s1491_s24, %s1492_s25  }
   0xd   :  { %s1493_s28 = smov [#allocation5]  }
   0xe   :  { %s36_s29 = sshll.u32 %s1493_s28, 4  ;;  %s37_s29 = int_to_ptr.vmem [resolvable:$true] %s36_s29 }
   0xf   :  { %s1474_s30 = scalar_lea.vmem %s37_s29, 2048  ;;  %p1479_p6 = scmp.lt.s32.totalorder %s37_s29, %s37_s29 }
  0x10   :  { %p1475_p5 = scmp.ne.s32.totalorder %s37_s29, %s1474_s30  ;;  %p1480_p7 = scmp.lt.s32.totalorder %s1474_s30, %s1474_s30 }
  0x12   :  { %p1481_p8 = por %p1480_p7, %p1479_p6 }
  0x14   :  { %p1482_p9 = pnand %p1481_p8, %p1475_p5 }
  0x16   :  { %1485 = shalt.err (!%p1482_p9)
}
  0x17   :  { %42 = dma.hbm_to_vmem [thread:$0]  %s1970_s4, 2048, %s37_s29, [#allocation6], %s1491_s24, %s1491_s24, %s1492_s25  }
  0x18   :  { %1486 = dma.done.wait [#allocation4], 2048  }
  0x19   :  { %1487 = vsyncadd [#allocation4], 4294965248 }
  0x1a   :  { %1488 = dma.done.wait [#allocation6], 2048  }
  0x1b   :  { %1489 = vsyncadd [#allocation6], 4294965248  ;;  %v1494_v0 = vmov 0.0   ;;  %vm1495_vm0 = vmmov 0   ;;  %v74_v1 = vld [vmem:[%s1967_s1 + $0x78] sm:$0xff]  ;;  %v73_v2 = vld [vmem:[%s1967_s1 + $0x70] sm:$0xff] }
  0x1c   :  { %1125 = vmatprep.subr.mxu1 %v1494_v0  ;;  %1157 = vmatprep.mubr.msk.f32.mxu1 %vm1495_vm0, %v1494_v0  ;;  %v1546_v3 = vld [vmem:[#allocation3 + $0x78] sm:$0xff]  ;;  %v1549_v4 = vld [vmem:[#allocation3 + $0x70] sm:$0xff]  ;;  %v72_v5 = vld [vmem:[%s1967_s1 + $0x68] sm:$0xff] }
  0x1d   :  { %1081 = vmatprep.subr.mxu0 %v74_v1  ;;  %1126 = vmatpush3.msra.mxu1 %v1546_v3  ;;  %v1555_v6 = vld [vmem:[#allocation3 + $0x68] sm:$0xff]  ;;  %v71_v7 = vld [vmem:[%s1967_s1 + $0x60] sm:$0xff]  ;;  %v70_v9 = vld [vmem:[%s1967_s1 + $0x58] sm:$0xff] }
  0x1e   :  { %1082 = vmatpush3.msra.mxu0 %v74_v1  ;;  %1127 = vmatprep.subr.mxu1 %v1494_v0  ;;  %v1562_v8 = vld [vmem:[#allocation3 + $0x60] sm:$0xff]  ;;  %v1569_v10 = vld [vmem:[#allocation3 + $0x58] sm:$0xff]  ;;  %v69_v11 = vld [vmem:[%s1967_s1 + $0x50] sm:$0xff] }
  0x1f   :  { %1083 = vmatprep.subr.mxu0 %v73_v2  ;;  %1128 = vmatpush3.msra.mxu1 %v1549_v4  ;;  %v1576_v12 = vld [vmem:[#allocation3 + $0x50] sm:$0xff]  ;;  %v68_v13 = vld [vmem:[%s1967_s1 + $0x48] sm:$0xff]  ;;  %v67_v15 = vld [vmem:[%s1967_s1 + $0x40] sm:$0xff] }
  0x20   :  { %1084 = vmatpush3.msra.mxu0 %v73_v2  ;;  %1129 = vmatprep.subr.mxu1 %v1494_v0  ;;  %v1583_v14 = vld [vmem:[#allocation3 + $0x48] sm:$0xff]  ;;  %v1590_v16 = vld [vmem:[#allocation3 + $0x40] sm:$0xff]  ;;  %v66_v17 = vld [vmem:[%s1967_s1 + $0x38] sm:$0xff] }
  0x21   :  { %1085 = vmatprep.subr.mxu0 %v72_v5  ;;  %1130 = vmatpush3.msra.mxu1 %v1555_v6  ;;  %v1597_v18 = vld [vmem:[#allocation3 + $0x38] sm:$0xff]  ;;  %v65_v19 = vld [vmem:[%s1967_s1 + $0x30] sm:$0xff]  ;;  %v64_v21 = vld [vmem:[%s1967_s1 + $0x28] sm:$0xff] }
  0x22   :  { %1086 = vmatpush3.msra.mxu0 %v72_v5  ;;  %1131 = vmatprep.subr.mxu1 %v1494_v0  ;;  %v1604_v20 = vld [vmem:[#allocation3 + $0x30] sm:$0xff]  ;;  %v1611_v22 = vld [vmem:[#allocation3 + $0x28] sm:$0xff]  ;;  %v63_v23 = vld [vmem:[%s1967_s1 + $0x20] sm:$0xff] }
  0x23   :  { %1087 = vmatprep.subr.mxu0 %v71_v7  ;;  %1132 = vmatpush3.msra.mxu1 %v1562_v8  ;;  %v1618_v24 = vld [vmem:[#allocation3 + $0x20] sm:$0xff]  ;;  %v62_v25 = vld [vmem:[%s1967_s1 + $0x18] sm:$0xff]  ;;  %v61_v27 = vld [vmem:[%s1967_s1 + $0x10] sm:$0xff] }
  0x24   :  { %1088 = vmatpush3.msra.mxu0 %v71_v7  ;;  %1133 = vmatprep.subr.mxu1 %v1494_v0  ;;  %v1625_v26 = vld [vmem:[#allocation3 + $0x18] sm:$0xff]  ;;  %v1632_v28 = vld [vmem:[#allocation3 + $0x10] sm:$0xff]  ;;  %v60_v29 = vld [vmem:[%s1967_s1 + $0x8] sm:$0xff] }
  0x25   :  { %1089 = vmatprep.subr.mxu0 %v70_v9  ;;  %1134 = vmatpush3.msra.mxu1 %v1569_v10  ;;  %v51_v30 = vld [vmem:[%s1966_s0] sm:$0xff]  ;;  %v1643_v31 = vld [vmem:[#allocation3 + $0x8] sm:$0xff]  ;;  %v53_v35 = vld [vmem:[%s1966_s0 + $0x10] sm:$0xff] }
  0x26   :  { %1090 = vmatpush3.msra.mxu0 %v70_v9  ;;  %1135 = vmatprep.subr.mxu1 %v1494_v0  ;;  %v59_v32 = vld [vmem:[%s1967_s1] sm:$0xff]  ;;  %v52_v34 = vld [vmem:[%s1966_s0 + $0x8] sm:$0xff]  ;;  %v54_v36 = vld [vmem:[%s1966_s0 + $0x18] sm:$0xff] }
  0x27   :  { %1091 = vmatprep.subr.mxu0 %v69_v11  ;;  %1136 = vmatpush3.msra.mxu1 %v1576_v12  ;;  %v1649_v33 = vld [vmem:[#allocation3] sm:$0xff]  ;;  %v56_v38 = vld [vmem:[%s1966_s0 + $0x28] sm:$0xff]  ;;  %v57_v39 = vld [vmem:[%s1966_s0 + $0x30] sm:$0xff] }
  0x28   :  { %1092 = vmatpush3.msra.mxu0 %v69_v11  ;;  %1137 = vmatprep.subr.mxu1 %v1494_v0  ;;  %v55_v37 = vld [vmem:[%s1966_s0 + $0x20] sm:$0xff]  ;;  %v58_v40 = vld [vmem:[%s1966_s0 + $0x38] sm:$0xff] }
  0x29   :  { %1093 = vmatprep.subr.mxu0 %v68_v13  ;;  %1138 = vmatpush3.msra.mxu1 %v1583_v14  ;;  %v1749_v43 = vld [vmem:[%s1969_s3] ss:$0 sm:$0xff] }
  0x2a   :  { %1094 = vmatpush3.msra.mxu0 %v68_v13  ;;  %1139 = vmatprep.subr.mxu1 %v1494_v0 }
  0x2b   :  { %1095 = vmatprep.subr.mxu0 %v67_v15  ;;  %1140 = vmatpush3.msra.mxu1 %v1590_v16 }
  0x2c   :  { %1096 = vmatpush3.msra.mxu0 %v67_v15  ;;  %1141 = vmatprep.subr.mxu1 %v1494_v0 }
  0x2d   :  { %1097 = vmatprep.subr.mxu0 %v66_v17  ;;  %1142 = vmatpush3.msra.mxu1 %v1597_v18 }
  0x2e   :  { %1098 = vmatpush3.msra.mxu0 %v66_v17  ;;  %1143 = vmatprep.subr.mxu1 %v1494_v0 }
  0x2f   :  { %1099 = vmatprep.subr.mxu0 %v65_v19  ;;  %1144 = vmatpush3.msra.mxu1 %v1604_v20 }
  0x30   :  { %1100 = vmatpush3.msra.mxu0 %v65_v19  ;;  %1145 = vmatprep.subr.mxu1 %v1494_v0 }
  0x31   :  { %1101 = vmatprep.subr.mxu0 %v64_v21  ;;  %1146 = vmatpush3.msra.mxu1 %v1611_v22 }
  0x32   :  { %1102 = vmatpush3.msra.mxu0 %v64_v21  ;;  %1147 = vmatprep.subr.mxu1 %v1494_v0 }
  0x33   :  { %1103 = vmatprep.subr.mxu0 %v63_v23  ;;  %1148 = vmatpush3.msra.mxu1 %v1618_v24 }
  0x34   :  { %1104 = vmatpush3.msra.mxu0 %v63_v23  ;;  %1149 = vmatprep.subr.mxu1 %v1494_v0  ;;  %v811_v23 = vld [vmem:[#allocation5 + $0x48] sm:$0xff] }
  0x35   :  { %1105 = vmatprep.subr.mxu0 %v62_v25  ;;  %1150 = vmatpush3.msra.mxu1 %v1625_v26 }
  0x36   :  { %1106 = vmatpush3.msra.mxu0 %v62_v25  ;;  %1151 = vmatprep.subr.mxu1 %v1494_v0  ;;  %v809_v25 = vld [vmem:[#allocation5 + $0x38] sm:$0xff] }
  0x37   :  { %1107 = vmatprep.subr.mxu0 %v61_v27  ;;  %1152 = vmatpush3.msra.mxu1 %v1632_v28 }
  0x38   :  { %1108 = vmatpush3.msra.mxu0 %v61_v27  ;;  %1153 = vmatprep.subr.mxu1 %v1494_v0  ;;  %v807_v27 = vld [vmem:[#allocation5 + $0x28] sm:$0xff] }
  0x39   :  { %1109 = vmatprep.subr.mxu0 %v60_v29  ;;  %1113 = vmatprep.mubr.f32.mxu0 %v51_v30 }
  0x3a   :  { %1110 = vmatpush3.msra.mxu0 %v60_v29  ;;  %1154 = vmatpush3.msra.mxu1 %v1643_v31  ;;  %v805_v29 = vld [vmem:[#allocation5 + $0x18] sm:$0xff] }
  0x3b   :  { %1111 = vmatprep.subr.mxu0 %v59_v32  ;;  %1155 = vmatprep.subr.mxu1 %v1494_v0 }
  0x3c   :  { %1112 = vmatpush3.msra.mxu0 %v59_v32  ;;  %1156 = vmatpush3.msra.mxu1 %v1649_v33 }
  0x3d   :  { %1114 = vmatmul.mubr.f32.vlgmr.msra.gmra.mxu0 %v52_v34  ;;  %1158 = vmatmul.mubr.f32.vlgmr.msra.gmra.mxu1 %v1494_v0 }
  0x3e   :  { %1160 = vmatprep.subr.mxu0 %v1494_v0  ;;  %1116 = vmatprep.mubr.f32.mxu0 %v53_v35  ;;  %v804_v35 = vld [vmem:[#allocation5 + $0x10] sm:$0xff] }
  0x3f   :  { %1161 = vmatpush3.msra.mxu0 %v1546_v3  ;;  %1195 = vmatprep.subr.mxu1 %v1494_v0 }
  0x40   :  { %1162 = vmatprep.subr.mxu0 %v1494_v0  ;;  %1196 = vmatpush3.msra.mxu1 %v1546_v3 }
  0x41   :  { %1163 = vmatpush3.msra.mxu0 %v1549_v4  ;;  %1197 = vmatprep.subr.mxu1 %v1494_v0 }
  0x42   :  { %1164 = vmatprep.subr.mxu0 %v1494_v0  ;;  %1117 = vmatmul.mubr.f32.gmra.mxu0 %v54_v36  ;;  %v803_v36 = vld [vmem:[#allocation5 + $0x8] sm:$0xff] }
  0x43   :  { %1165 = vmatpush3.msra.mxu0 %v1555_v6  ;;  %1119 = vmatprep.mubr.f32.mxu0 %v55_v37  ;;  %v802_v37 = vld [vmem:[#allocation5] sm:$0xff] }
  0x44   :  { %1166 = vmatprep.subr.mxu0 %v1494_v0  ;;  %1198 = vmatpush3.msra.mxu1 %v1549_v4 }
  0x45   :  { %1167 = vmatpush3.msra.mxu0 %v1562_v8  ;;  %1199 = vmatprep.subr.mxu1 %v1494_v0 }
  0x46   :  { %1168 = vmatprep.subr.mxu0 %v1494_v0  ;;  %1120 = vmatmul.mubr.f32.gmra.mxu0 %v56_v38 }
  0x47   :  { %1169 = vmatpush3.msra.mxu0 %v1569_v10  ;;  %1200 = vmatpush3.msra.mxu1 %v1555_v6 }
  0x48   :  { %1170 = vmatprep.subr.mxu0 %v1494_v0  ;;  %1201 = vmatprep.subr.mxu1 %v1494_v0 }
  0x49   :  { %1171 = vmatpush3.msra.mxu0 %v1576_v12  ;;  %1202 = vmatpush3.msra.mxu1 %v1562_v8 }
  0x4a   :  { %1172 = vmatprep.subr.mxu0 %v1494_v0  ;;  %1203 = vmatprep.subr.mxu1 %v1494_v0 }
  0x4b   :  { %1173 = vmatpush3.msra.mxu0 %v1583_v14  ;;  %1204 = vmatpush3.msra.mxu1 %v1569_v10 }
  0x4c   :  { %1174 = vmatprep.subr.mxu0 %v1494_v0  ;;  %1205 = vmatprep.subr.mxu1 %v1494_v0 }
  0x4d   :  { %1175 = vmatpush3.msra.mxu0 %v1590_v16  ;;  %1206 = vmatpush3.msra.mxu1 %v1576_v12 }
  0x4e   :  { %1176 = vmatprep.subr.mxu0 %v1494_v0  ;;  %1207 = vmatprep.subr.mxu1 %v1494_v0 }
  0x4f   :  { %1177 = vmatpush3.msra.mxu0 %v1597_v18  ;;  %1208 = vmatpush3.msra.mxu1 %v1583_v14 }
  0x50   :  { %1178 = vmatprep.subr.mxu0 %v1494_v0  ;;  %1209 = vmatprep.subr.mxu1 %v1494_v0 }
  0x51   :  { %1179 = vmatpush3.msra.mxu0 %v1604_v20  ;;  %1210 = vmatpush3.msra.mxu1 %v1590_v16 }
  0x52   :  { %1180 = vmatprep.subr.mxu0 %v1494_v0  ;;  %1211 = vmatprep.subr.mxu1 %v1494_v0 }
  0x53   :  { %1181 = vmatpush3.msra.mxu0 %v1611_v22  ;;  %1212 = vmatpush3.msra.mxu1 %v1597_v18 }
  0x54   :  { %1182 = vmatprep.subr.mxu0 %v1494_v0  ;;  %1213 = vmatprep.subr.mxu1 %v1494_v0 }
  0x55   :  { %1183 = vmatpush3.msra.mxu0 %v1618_v24  ;;  %1214 = vmatpush3.msra.mxu1 %v1604_v20 }
  0x56   :  { %1184 = vmatprep.subr.mxu0 %v1494_v0  ;;  %1215 = vmatprep.subr.mxu1 %v1494_v0 }
  0x57   :  { %1185 = vmatpush3.msra.mxu0 %v1625_v26  ;;  %1216 = vmatpush3.msra.mxu1 %v1611_v22 }
  0x58   :  { %1186 = vmatprep.subr.mxu0 %v1494_v0  ;;  %1217 = vmatprep.subr.mxu1 %v1494_v0 }
  0x59   :  { %1187 = vmatpush3.msra.mxu0 %v1632_v28  ;;  %1218 = vmatpush3.msra.mxu1 %v1618_v24 }
  0x5a   :  { %1188 = vmatprep.subr.mxu0 %v1494_v0  ;;  %1219 = vmatprep.subr.mxu1 %v1494_v0 }
  0x5b   :  { %1189 = vmatpush3.msra.mxu0 %v1643_v31  ;;  %1220 = vmatpush3.msra.mxu1 %v1625_v26 }
  0x5c   :  { %1190 = vmatprep.subr.mxu0 %v1494_v0  ;;  %1221 = vmatprep.subr.mxu1 %v1494_v0 }
  0x5d   :  { %1191 = vmatpush3.msra.mxu0 %v1649_v33  ;;  %1222 = vmatpush3.msra.mxu1 %v1632_v28 }
  0x5e   :  { %1223 = vmatprep.subr.mxu1 %v1494_v0  ;;  %1227 = vmatprep.mubr.msk.f32.mxu1 %vm1495_vm0, %v1494_v0 }
  0x5f   :  { %1224 = vmatpush3.msra.mxu1 %v1643_v31  ;;  %1230 = vmatprep.subr.mxu0 %v1494_v0 }
  0x60   :  { %1225 = vmatprep.subr.mxu1 %v1494_v0  ;;  %1122 = vmatprep.mubr.f32.mxu0 %v57_v39 }
  0x61   :  { %1226 = vmatpush3.msra.mxu1 %v1649_v33  ;;  %1123 = vmatmul.mubr.f32.gmra.mxu0 %v58_v40 }
  0x62   :  { %1265 = vmatprep.subr.mxu1 %v1494_v0  ;;  %1192 = vmatprep.mubr.msk.f32.mxu0 %vm1495_vm0, %v1494_v0 }
  0xfd   :  { %v1115_v41 = vpop.f32.mrf.mxu0  ;;  %v278_v42 = vpop.f32.mrf.mxu1 }
  0xfe   :  { %v154_v55 = vadd.f32 %v1115_v41, %v1749_v43 }
  0xff   :  { %v148_v44 = vpop.f32.mrf.mxu0  ;;  %v1159_v45 = vpop.f32.mrf.mxu1 }
 0x100   :  { %v149_v46 = vadd.f32 %v1749_v43, %v148_v44  ;;  %v903_v44 = vld [vmem:[%s1971_s5] ss:$0 sm:$0xff] }
 0x102   :  { %v282_v47 = vadd.f32 %v278_v42, %v149_v46  ;;  %v1786_v49 = vpop.f32.mrf.mxu0 }
 0x103   :  { %v164_v2 = vadd.f32 %v1786_v49, %v1749_v43 }
 0x104   :  { %v283_v48 = vmax.f32 %v282_v47, 0.0  ;;  %v158_v50 = vpop.f32.mrf.mxu0 }
 0x105   :  { %v159_v60 = vadd.f32 %v1749_v43, %v158_v50 }
 0x106   :  { %1193 = vmatmul.mubr.f32.vlgmr.msra.gmra.mxu0 %v283_v48  ;;  %v1788_v51 = vpop.f32.mrf.mxu0 }
 0x107   :  { %1231 = vmatpush3.msra.mxu0 %v1546_v3  ;;  %1262 = vmatprep.mubr.msk.f32.mxu0 %vm1495_vm0, %v1494_v0 }
 0x108   :  { %1232 = vmatprep.subr.mxu0 %v1494_v0  ;;  %v1790_v52 = vpop.f32.mrf.mxu0 }
 0x109   :  { %1233 = vmatpush3.msra.mxu0 %v1549_v4  ;;  %v169_v13 = vadd.f32 %v1749_v43, %v1790_v52 }
 0x10a   :  { %1234 = vmatprep.subr.mxu0 %v1494_v0 }
 0x10b   :  { %1235 = vmatpush3.msra.mxu0 %v1555_v6 }
 0x10c   :  { %1236 = vmatprep.subr.mxu0 %v1494_v0 }
 0x10d   :  { %1237 = vmatpush3.msra.mxu0 %v1562_v8 }
 0x10e   :  { %1238 = vmatprep.subr.mxu0 %v1494_v0 }
 0x10f   :  { %1239 = vmatpush3.msra.mxu0 %v1569_v10 }
 0x110   :  { %1240 = vmatprep.subr.mxu0 %v1494_v0 }
 0x111   :  { %1241 = vmatpush3.msra.mxu0 %v1576_v12 }
 0x112   :  { %1242 = vmatprep.subr.mxu0 %v1494_v0 }
 0x113   :  { %1243 = vmatpush3.msra.mxu0 %v1583_v14 }
 0x114   :  { %1244 = vmatprep.subr.mxu0 %v1494_v0 }
 0x115   :  { %1245 = vmatpush3.msra.mxu0 %v1590_v16 }
 0x116   :  { %1246 = vmatprep.subr.mxu0 %v1494_v0 }
 0x117   :  { %1247 = vmatpush3.msra.mxu0 %v1597_v18 }
 0x118   :  { %1248 = vmatprep.subr.mxu0 %v1494_v0 }
 0x119   :  { %1249 = vmatpush3.msra.mxu0 %v1604_v20 }
 0x11a   :  { %1250 = vmatprep.subr.mxu0 %v1494_v0 }
 0x11b   :  { %1251 = vmatpush3.msra.mxu0 %v1611_v22 }
 0x11c   :  { %1252 = vmatprep.subr.mxu0 %v1494_v0 }
 0x11d   :  { %1253 = vmatpush3.msra.mxu0 %v1618_v24 }
 0x11e   :  { %1254 = vmatprep.subr.mxu0 %v1494_v0 }
 0x11f   :  { %1255 = vmatpush3.msra.mxu0 %v1625_v26 }
 0x120   :  { %1256 = vmatprep.subr.mxu0 %v1494_v0 }
 0x121   :  { %1257 = vmatpush3.msra.mxu0 %v1632_v28  ;;  %v1792_v53 = vpop.f32.mrf.mxu0 }
 0x122   :  { %1258 = vmatprep.subr.mxu0 %v1494_v0  ;;  %v184_v38 = vadd.f32 %v1792_v53, %v1749_v43 }
 0x123   :  { %1259 = vmatpush3.msra.mxu0 %v1643_v31  ;;  %v1794_v54 = vpop.f32.mrf.mxu0 }
 0x124   :  { %1260 = vmatprep.subr.mxu0 %v1494_v0  ;;  %v179_v30 = vadd.f32 %v1749_v43, %v1794_v54 }
 0x125   :  { %1261 = vmatpush3.msra.mxu0 %v1649_v33 }
 0x126   :  { %1300 = vmatprep.subr.mxu0 %v1494_v0 }
 0x1c6   :  { %v352_v56 = vpop.f32.mrf.mxu0 }
 0x1c7   :  { %v356_v57 = vadd.f32 %v352_v56, %v154_v55 }
 0x1c8   :  { %v1194_v58 = vpop.f32.mrf.mxu0 }
 0x1c9   :  { %v357_v59 = vmax.f32 %v356_v57, 0.0 }
 0x1cb   :  { %1228 = vmatmul.mubr.f32.vlgmr.msra.gmra.mxu1 %v357_v59 }
 0x1cc   :  { %1266 = vmatpush3.msra.mxu1 %v1546_v3  ;;  %1297 = vmatprep.mubr.msk.f32.mxu1 %vm1495_vm0, %v1494_v0 }
 0x1cd   :  { %1267 = vmatprep.subr.mxu1 %v1494_v0 }
 0x1ce   :  { %1268 = vmatpush3.msra.mxu1 %v1549_v4 }
 0x1cf   :  { %1269 = vmatprep.subr.mxu1 %v1494_v0 }
 0x1d0   :  { %1270 = vmatpush3.msra.mxu1 %v1555_v6 }
 0x1d1   :  { %1271 = vmatprep.subr.mxu1 %v1494_v0 }
 0x1d2   :  { %1272 = vmatpush3.msra.mxu1 %v1562_v8 }
 0x1d3   :  { %1273 = vmatprep.subr.mxu1 %v1494_v0 }
 0x1d4   :  { %1274 = vmatpush3.msra.mxu1 %v1569_v10 }
 0x1d5   :  { %1275 = vmatprep.subr.mxu1 %v1494_v0 }
 0x1d6   :  { %1276 = vmatpush3.msra.mxu1 %v1576_v12 }
 0x1d7   :  { %1277 = vmatprep.subr.mxu1 %v1494_v0 }
 0x1d8   :  { %1278 = vmatpush3.msra.mxu1 %v1583_v14 }
 0x1d9   :  { %1279 = vmatprep.subr.mxu1 %v1494_v0 }
 0x1da   :  { %1280 = vmatpush3.msra.mxu1 %v1590_v16 }
 0x1db   :  { %1281 = vmatprep.subr.mxu1 %v1494_v0 }
 0x1dc   :  { %1282 = vmatpush3.msra.mxu1 %v1597_v18 }
 0x1dd   :  { %1283 = vmatprep.subr.mxu1 %v1494_v0 }
 0x1de   :  { %1284 = vmatpush3.msra.mxu1 %v1604_v20 }
 0x1df   :  { %1285 = vmatprep.subr.mxu1 %v1494_v0 }
 0x1e0   :  { %1286 = vmatpush3.msra.mxu1 %v1611_v22 }
 0x1e1   :  { %1287 = vmatprep.subr.mxu1 %v1494_v0 }
 0x1e2   :  { %1288 = vmatpush3.msra.mxu1 %v1618_v24 }
 0x1e3   :  { %1289 = vmatprep.subr.mxu1 %v1494_v0 }
 0x1e4   :  { %1290 = vmatpush3.msra.mxu1 %v1625_v26 }
 0x1e5   :  { %1291 = vmatprep.subr.mxu1 %v1494_v0 }
 0x1e6   :  { %1292 = vmatpush3.msra.mxu1 %v1632_v28 }
 0x1e7   :  { %1293 = vmatprep.subr.mxu1 %v1494_v0 }
 0x1e8   :  { %1294 = vmatpush3.msra.mxu1 %v1643_v31 }
 0x1e9   :  { %1295 = vmatprep.subr.mxu1 %v1494_v0 }
 0x1ea   :  { %1296 = vmatpush3.msra.mxu1 %v1649_v33 }
 0x1eb   :  { %1335 = vmatprep.subr.mxu1 %v1494_v0 }
 0x28b   :  { %v426_v61 = vpop.f32.mrf.mxu1 }
 0x28c   :  { %v430_v62 = vadd.f32 %v426_v61, %v159_v60 }
 0x28d   :  { %v1229_v63 = vpop.f32.mrf.mxu1 }
 0x28e   :  { %v431_v1 = vmax.f32 %v430_v62, 0.0 }
 0x290   :  { %1263 = vmatmul.mubr.f32.vlgmr.msra.gmra.mxu0 %v431_v1 }
 0x291   :  { %1301 = vmatpush3.msra.mxu0 %v1546_v3  ;;  %1332 = vmatprep.mubr.msk.f32.mxu0 %vm1495_vm0, %v1494_v0 }
 0x292   :  { %1302 = vmatprep.subr.mxu0 %v1494_v0 }
 0x293   :  { %1303 = vmatpush3.msra.mxu0 %v1549_v4 }
 0x294   :  { %1304 = vmatprep.subr.mxu0 %v1494_v0 }
 0x295   :  { %1305 = vmatpush3.msra.mxu0 %v1555_v6 }
 0x296   :  { %1306 = vmatprep.subr.mxu0 %v1494_v0 }
 0x297   :  { %1307 = vmatpush3.msra.mxu0 %v1562_v8 }
 0x298   :  { %1308 = vmatprep.subr.mxu0 %v1494_v0 }
 0x299   :  { %1309 = vmatpush3.msra.mxu0 %v1569_v10 }
 0x29a   :  { %1310 = vmatprep.subr.mxu0 %v1494_v0 }
 0x29b   :  { %1311 = vmatpush3.msra.mxu0 %v1576_v12 }
 0x29c   :  { %1312 = vmatprep.subr.mxu0 %v1494_v0 }
 0x29d   :  { %1313 = vmatpush3.msra.mxu0 %v1583_v14 }
 0x29e   :  { %1314 = vmatprep.subr.mxu0 %v1494_v0 }
 0x29f   :  { %1315 = vmatpush3.msra.mxu0 %v1590_v16 }
 0x2a0   :  { %1316 = vmatprep.subr.mxu0 %v1494_v0 }
 0x2a1   :  { %1317 = vmatpush3.msra.mxu0 %v1597_v18 }
 0x2a2   :  { %1318 = vmatprep.subr.mxu0 %v1494_v0 }
 0x2a3   :  { %1319 = vmatpush3.msra.mxu0 %v1604_v20 }
 0x2a4   :  { %1320 = vmatprep.subr.mxu0 %v1494_v0 }
 0x2a5   :  { %1321 = vmatpush3.msra.mxu0 %v1611_v22 }
 0x2a6   :  { %1322 = vmatprep.subr.mxu0 %v1494_v0 }
 0x2a7   :  { %1323 = vmatpush3.msra.mxu0 %v1618_v24 }
 0x2a8   :  { %1324 = vmatprep.subr.mxu0 %v1494_v0 }
 0x2a9   :  { %1325 = vmatpush3.msra.mxu0 %v1625_v26 }
 0x2aa   :  { %1326 = vmatprep.subr.mxu0 %v1494_v0 }
 0x2ab   :  { %1327 = vmatpush3.msra.mxu0 %v1632_v28 }
 0x2ac   :  { %1328 = vmatprep.subr.mxu0 %v1494_v0 }
 0x2ad   :  { %1329 = vmatpush3.msra.mxu0 %v1643_v31 }
 0x2ae   :  { %1330 = vmatprep.subr.mxu0 %v1494_v0 }
 0x2af   :  { %1331 = vmatpush3.msra.mxu0 %v1649_v33 }
 0x2b0   :  { %1370 = vmatprep.subr.mxu0 %v1494_v0 }
 0x350   :  { %v500_v5 = vpop.f32.mrf.mxu0 }
 0x351   :  { %v504_v7 = vadd.f32 %v500_v5, %v164_v2 }
 0x352   :  { %v1264_v9 = vpop.f32.mrf.mxu0 }
 0x353   :  { %v505_v11 = vmax.f32 %v504_v7, 0.0 }
 0x355   :  { %1298 = vmatmul.mubr.f32.vlgmr.msra.gmra.mxu1 %v505_v11 }
 0x356   :  { %1336 = vmatpush3.msra.mxu1 %v1546_v3  ;;  %1367 = vmatprep.mubr.msk.f32.mxu1 %vm1495_vm0, %v1494_v0 }
 0x357   :  { %1337 = vmatprep.subr.mxu1 %v1494_v0 }
 0x358   :  { %1338 = vmatpush3.msra.mxu1 %v1549_v4 }
 0x359   :  { %1339 = vmatprep.subr.mxu1 %v1494_v0 }
 0x35a   :  { %1340 = vmatpush3.msra.mxu1 %v1555_v6 }
 0x35b   :  { %1341 = vmatprep.subr.mxu1 %v1494_v0 }
 0x35c   :  { %1342 = vmatpush3.msra.mxu1 %v1562_v8 }
 0x35d   :  { %1343 = vmatprep.subr.mxu1 %v1494_v0 }
 0x35e   :  { %1344 = vmatpush3.msra.mxu1 %v1569_v10 }
 0x35f   :  { %1345 = vmatprep.subr.mxu1 %v1494_v0 }
 0x360   :  { %1346 = vmatpush3.msra.mxu1 %v1576_v12 }
 0x361   :  { %1347 = vmatprep.subr.mxu1 %v1494_v0 }
 0x362   :  { %1348 = vmatpush3.msra.mxu1 %v1583_v14 }
 0x363   :  { %1349 = vmatprep.subr.mxu1 %v1494_v0 }
 0x364   :  { %1350 = vmatpush3.msra.mxu1 %v1590_v16 }
 0x365   :  { %1351 = vmatprep.subr.mxu1 %v1494_v0 }
 0x366   :  { %1352 = vmatpush3.msra.mxu1 %v1597_v18 }
 0x367   :  { %1353 = vmatprep.subr.mxu1 %v1494_v0 }
 0x368   :  { %1354 = vmatpush3.msra.mxu1 %v1604_v20 }
 0x369   :  { %1355 = vmatprep.subr.mxu1 %v1494_v0 }
 0x36a   :  { %1356 = vmatpush3.msra.mxu1 %v1611_v22 }
 0x36b   :  { %1357 = vmatprep.subr.mxu1 %v1494_v0 }
 0x36c   :  { %1358 = vmatpush3.msra.mxu1 %v1618_v24 }
 0x36d   :  { %1359 = vmatprep.subr.mxu1 %v1494_v0 }
 0x36e   :  { %1360 = vmatpush3.msra.mxu1 %v1625_v26 }
 0x36f   :  { %1361 = vmatprep.subr.mxu1 %v1494_v0 }
 0x370   :  { %1362 = vmatpush3.msra.mxu1 %v1632_v28 }
 0x371   :  { %1363 = vmatprep.subr.mxu1 %v1494_v0 }
 0x372   :  { %1364 = vmatpush3.msra.mxu1 %v1643_v31 }
 0x373   :  { %1365 = vmatprep.subr.mxu1 %v1494_v0 }
 0x374   :  { %1366 = vmatpush3.msra.mxu1 %v1649_v33 }
 0x375   :  { %1405 = vmatprep.subr.mxu1 %v1494_v0 }
 0x415   :  { %v574_v15 = vpop.f32.mrf.mxu1 }
 0x416   :  { %v578_v17 = vadd.f32 %v574_v15, %v169_v13 }
 0x417   :  { %v1299_v19 = vpop.f32.mrf.mxu1 }
 0x418   :  { %v579_v21 = vmax.f32 %v578_v17, 0.0 }
 0x41a   :  { %1333 = vmatmul.mubr.f32.vlgmr.msra.gmra.mxu0 %v579_v21 }
 0x41b   :  { %1371 = vmatpush3.msra.mxu0 %v1546_v3  ;;  %1402 = vmatprep.mubr.msk.f32.mxu0 %vm1495_vm0, %v1494_v0  ;;  %v174_v3 = vadd.f32 %v1788_v51, %v1749_v43 }
 0x41c   :  { %1372 = vmatprep.subr.mxu0 %v1494_v0 }
 0x41d   :  { %1373 = vmatpush3.msra.mxu0 %v1549_v4 }
 0x41e   :  { %1374 = vmatprep.subr.mxu0 %v1494_v0 }
 0x41f   :  { %1375 = vmatpush3.msra.mxu0 %v1555_v6 }
 0x420   :  { %1376 = vmatprep.subr.mxu0 %v1494_v0 }
 0x421   :  { %1377 = vmatpush3.msra.mxu0 %v1562_v8 }
 0x422   :  { %1378 = vmatprep.subr.mxu0 %v1494_v0 }
 0x423   :  { %1379 = vmatpush3.msra.mxu0 %v1569_v10 }
 0x424   :  { %1380 = vmatprep.subr.mxu0 %v1494_v0 }
 0x425   :  { %1381 = vmatpush3.msra.mxu0 %v1576_v12  ;;  %v817_v12 = vld [vmem:[#allocation5 + $0x78] sm:$0xff] }
 0x426   :  { %1382 = vmatprep.subr.mxu0 %v1494_v0 }
 0x427   :  { %1383 = vmatpush3.msra.mxu0 %v1583_v14  ;;  %v816_v14 = vld [vmem:[#allocation5 + $0x70] sm:$0xff] }
 0x428   :  { %1384 = vmatprep.subr.mxu0 %v1494_v0 }
 0x429   :  { %1385 = vmatpush3.msra.mxu0 %v1590_v16  ;;  %v815_v16 = vld [vmem:[#allocation5 + $0x68] sm:$0xff] }
 0x42a   :  { %1386 = vmatprep.subr.mxu0 %v1494_v0 }
 0x42b   :  { %1387 = vmatpush3.msra.mxu0 %v1597_v18  ;;  %v814_v18 = vld [vmem:[#allocation5 + $0x60] sm:$0xff] }
 0x42c   :  { %1388 = vmatprep.subr.mxu0 %v1494_v0 }
 0x42d   :  { %1389 = vmatpush3.msra.mxu0 %v1604_v20  ;;  %v813_v20 = vld [vmem:[#allocation5 + $0x58] sm:$0xff] }
 0x42e   :  { %1390 = vmatprep.subr.mxu0 %v1494_v0 }
 0x42f   :  { %1391 = vmatpush3.msra.mxu0 %v1611_v22  ;;  %v812_v22 = vld [vmem:[#allocation5 + $0x50] sm:$0xff] }
 0x430   :  { %1392 = vmatprep.subr.mxu0 %v1494_v0 }
 0x431   :  { %1393 = vmatpush3.msra.mxu0 %v1618_v24  ;;  %v810_v24 = vld [vmem:[#allocation5 + $0x40] sm:$0xff] }
 0x432   :  { %1394 = vmatprep.subr.mxu0 %v1494_v0 }
 0x433   :  { %1395 = vmatpush3.msra.mxu0 %v1625_v26  ;;  %v808_v26 = vld [vmem:[#allocation5 + $0x30] sm:$0xff] }
 0x434   :  { %1396 = vmatprep.subr.mxu0 %v1494_v0 }
 0x435   :  { %1397 = vmatpush3.msra.mxu0 %v1632_v28  ;;  %v806_v28 = vld [vmem:[#allocation5 + $0x20] sm:$0xff] }
 0x436   :  { %1398 = vmatprep.subr.mxu0 %v1494_v0 }
 0x437   :  { %1399 = vmatpush3.msra.mxu0 %v1643_v31 }
 0x438   :  { %1400 = vmatprep.subr.mxu0 %v1494_v0 }
 0x439   :  { %1401 = vmatpush3.msra.mxu0 %v1649_v33 }
 0x4da   :  { %v648_v4 = vpop.f32.mrf.mxu0 }
 0x4db   :  { %v652_v6 = vadd.f32 %v648_v4, %v174_v3 }
 0x4dc   :  { %v1334_v8 = vpop.f32.mrf.mxu0 }
 0x4dd   :  { %v653_v10 = vmax.f32 %v652_v6, 0.0 }
 0x4df   :  { %1368 = vmatmul.mubr.f32.vlgmr.msra.gmra.mxu1 %v653_v10 }
 0x4e0   :  { %1437 = vmatprep.mubr.msk.f32.mxu1 %vm1495_vm0, %v1494_v0  ;;  %1406 = vmatpush3.msra.mxu1 %v817_v12 }
 0x4e1   :  { %1407 = vmatprep.subr.mxu1 %v1494_v0 }
 0x4e2   :  { %1408 = vmatpush3.msra.mxu1 %v816_v14 }
 0x4e3   :  { %1409 = vmatprep.subr.mxu1 %v1494_v0 }
 0x4e4   :  { %1410 = vmatpush3.msra.mxu1 %v815_v16 }
 0x4e5   :  { %1411 = vmatprep.subr.mxu1 %v1494_v0 }
 0x4e6   :  { %1412 = vmatpush3.msra.mxu1 %v814_v18 }
 0x4e7   :  { %1413 = vmatprep.subr.mxu1 %v1494_v0 }
 0x4e8   :  { %1414 = vmatpush3.msra.mxu1 %v813_v20 }
 0x4e9   :  { %1415 = vmatprep.subr.mxu1 %v1494_v0 }
 0x4ea   :  { %1416 = vmatpush3.msra.mxu1 %v812_v22 }
 0x4eb   :  { %1417 = vmatprep.subr.mxu1 %v1494_v0 }
 0x4ec   :  { %1418 = vmatpush3.msra.mxu1 %v811_v23 }
 0x4ed   :  { %1419 = vmatprep.subr.mxu1 %v1494_v0 }
 0x4ee   :  { %1420 = vmatpush3.msra.mxu1 %v810_v24 }
 0x4ef   :  { %1421 = vmatprep.subr.mxu1 %v1494_v0 }
 0x4f0   :  { %1422 = vmatpush3.msra.mxu1 %v809_v25 }
 0x4f1   :  { %1423 = vmatprep.subr.mxu1 %v1494_v0 }
 0x4f2   :  { %1424 = vmatpush3.msra.mxu1 %v808_v26 }
 0x4f3   :  { %1425 = vmatprep.subr.mxu1 %v1494_v0 }
 0x4f4   :  { %1426 = vmatpush3.msra.mxu1 %v807_v27 }
 0x4f5   :  { %1427 = vmatprep.subr.mxu1 %v1494_v0 }
 0x4f6   :  { %1428 = vmatpush3.msra.mxu1 %v806_v28 }
 0x4f7   :  { %1429 = vmatprep.subr.mxu1 %v1494_v0 }
 0x4f8   :  { %1430 = vmatpush3.msra.mxu1 %v805_v29 }
 0x4f9   :  { %1431 = vmatprep.subr.mxu1 %v1494_v0 }
 0x4fa   :  { %1432 = vmatpush3.msra.mxu1 %v804_v35 }
 0x4fb   :  { %1433 = vmatprep.subr.mxu1 %v1494_v0 }
 0x4fc   :  { %1434 = vmatpush3.msra.mxu1 %v803_v36 }
 0x4fd   :  { %1435 = vmatprep.subr.mxu1 %v1494_v0 }
 0x4fe   :  { %1436 = vmatpush3.msra.mxu1 %v802_v37 }
 0x59f   :  { %v722_v31 = vpop.f32.mrf.mxu1 }
 0x5a0   :  { %v726_v32 = vadd.f32 %v722_v31, %v179_v30 }
 0x5a1   :  { %v1369_v33 = vpop.f32.mrf.mxu1 }
 0x5a2   :  { %v727_v34 = vmax.f32 %v726_v32, 0.0 }
 0x5a4   :  { %1403 = vmatmul.mubr.f32.vlgmr.msra.gmra.mxu0 %v727_v34 }
 0x664   :  { %v796_v39 = vpop.f32.mrf.mxu0 }
 0x665   :  { %v800_v40 = vadd.f32 %v796_v39, %v184_v38 }
 0x666   :  { %v1404_v41 = vpop.f32.mrf.mxu0 }
 0x667   :  { %v801_v42 = vmax.f32 %v800_v40, 0.0 }
 0x669   :  { %1438 = vmatmul.mubr.f32.vlgmr.msra.gmra.mxu1 %v801_v42 }
 0x729   :  { %v891_v45 = vpop.f32.mrf.mxu1 }
 0x72a   :  { %v892_v46 = vadd.f32 %v903_v44, %v891_v45 }
 0x72b   :  { %v1439_v47 = vpop.f32.mrf.mxu1 }
 0x72c   :  { %895 = vst [vmem:[%s1972_s6] sm:$0xff] %v892_v46 }
 0x72d   :  { %900 = vsyncpa [#allocation4], 1 }
 0x72e   :  { %901 = vsyncpa [#allocation6], 1 }

</bundles_post_ra>
